<compile_context>
chip_gen: v6e
topology: v6e:2x2x1
jax: 0.10.0
libtpu: 0.0.40
codegen_flags: <defaults>
</compile_context>

<pallas_src>
import jax
import jax.numpy as jnp
from jax import lax
from jax.experimental import pallas as pl
from jax.experimental.pallas import tpu as pltpu


def _branch1_kernel(x_ref, w_ref, b_ref, o_ref):
    # x_ref: (1, K, T)   w_ref: (width, K)   b_ref: (width, 1)   o_ref: (1, width, T)
    # NN-form matmul: the K=5 contraction sits on sublanes of x; lanes of the
    # result stay the dense flattened-spatial dim T.
    z = lax.dot_general(
        w_ref[...], x_ref[0],
        dimension_numbers=(((1,), (0,)), ((), ())),
        preferred_element_type=jnp.float32,
    )                                                    # (width, T), f32 accum
    # Single full-block, unmasked, lane-dense store.  The channels-first
    # permute is free: the output layout is already (width, flattened spatial).
    o_ref[0] = (z + b_ref[...]).astype(o_ref.dtype)


def _pick_tx(Xp, Yp, width, itemsize, max_block_bytes):
    """Largest x-row tile tx s.t. tx | Xp, the flattened block lane extent
    (tx*Yp) is a multiple of 128 (or the whole sample), and the output block
    fits the per-step budget."""
    valid = [tx for tx in range(1, Xp + 1)
             if Xp % tx == 0 and (tx == Xp or (tx * Yp) % 128 == 0)]
    fitting = [tx for tx in valid if width * tx * Yp * itemsize <= max_block_bytes]
    return max(fitting) if fitting else min(valid)


def branch1_forward(x, weight, bias, *, max_block_bytes=2 * 1024 * 1024):
    """branch1: pad(replicate Y+8, zero X+8) -> Linear(5,width) -> NCHW permute.

    x:      (B, X, Y, 5)  float32
    weight: (width, 5)    (PyTorch nn.Linear layout)
    bias:   (width,)
    returns (B, width, X+8, Y+8) float32
    """
    B, X, Y, K = x.shape
    width = weight.shape[0]
    assert weight.shape == (width, K) and bias.shape == (width,)
    Xp, Yp = X + 8, Y + 8
    Sp = Xp * Yp
    itemsize = 4

    xf = x.astype(jnp.float32)
    w = weight.astype(jnp.float32)                    # (width, K)
    b2 = bias.reshape(width, 1).astype(jnp.float32)   # (width, 1)

    # --- tiny input-side pre-pass (XLA fuses into ~one pass over the small
    # input): channels-first so the kernel sees a dense lane dim (flattened
    # spatial) instead of K=5 on lanes; both pads applied here so the kernel
    # body has no reshapes, masks or second store.
    x_cf = jnp.transpose(xf, (0, 3, 1, 2))                              # (B, K, X, Y)
    x_cf = jnp.concatenate(
        [x_cf, jnp.broadcast_to(x_cf[:, :, :, Y - 1:Y], (B, K, X, 8))],
        axis=3)                                                         # replicate +8 on Y
    x_cf = jnp.concatenate(
        [x_cf, jnp.zeros((B, K, 8, Yp), jnp.float32)], axis=2)          # zero +8 on X
    x_cf = x_cf.reshape(B, K, Sp)                                       # free row-major

    # --- tiling -----------------------------------------------------------
    tx = _pick_tx(Xp, Yp, width, itemsize, max_block_bytes)
    T = tx * Yp
    n_sp = Xp // tx

    # Explicit VMEM budget: double-buffered in/out blocks + resident w/b,
    # with generous headroom.
    in_blk = 8 * T * itemsize                 # K=5 rows pad to 8 sublanes in VMEM
    out_blk = width * T * itemsize
    needed = 2 * (in_blk + out_blk) + 4 * width * 128 * itemsize
    vmem_limit = int(min(128 * 1024 * 1024,
                         max(2 * needed, 4 * 1024 * 1024) + (2 << 20)))

    cost = pl.CostEstimate(
        flops=2 * B * width * K * Sp,
        transcendentals=0,
        bytes_accessed=itemsize * (B * K * Sp + width * K + width + B * width * Sp),
    )

    out = pl.pallas_call(
        _branch1_kernel,
        out_shape=jax.ShapeDtypeStruct((B, width, Sp), jnp.float32),
        grid=(B, n_sp),
        in_specs=[
            pl.BlockSpec((1, K, T), lambda b, s: (b, 0, s)),
            pl.BlockSpec((width, K), lambda b, s: (0, 0)),   # VMEM-resident weight
            pl.BlockSpec((width, 1), lambda b, s: (0, 0)),   # VMEM-resident bias
        ],
        out_specs=pl.BlockSpec((1, width, T), lambda b, s: (b, 0, s)),
        compiler_params=pltpu.CompilerParams(
            dimension_semantics=("parallel", "parallel"),
            vmem_limit_bytes=vmem_limit),
        cost_estimate=cost,
    )(x_cf, w, b2)

    # Channels-first with flattened spatial -> (B, width, Xp, Yp): free reshape.
    return out.reshape(B, width, Xp, Yp)


def init_branch1_params(width, in_features=5, seed=0):
    """Deterministic synthetic params matching nn.Linear(5, width) shapes."""
    key = jax.random.PRNGKey(seed)
    kw, kb = jax.random.split(key)
    bound = 1.0 / (in_features ** 0.5)  # PyTorch default uniform bound
    weight = jax.random.uniform(kw, (width, in_features), jnp.float32, -bound, bound)
    bias = jax.random.uniform(kb, (width,), jnp.float32, -bound, bound)
    return weight, bias


if __name__ == "__main__":
    width = 32
    B, X, Y, K = 2, 24, 24, 5     # small shapes; last dim must be 5 per the module

    key = jax.random.PRNGKey(0)
    x = jax.random.normal(key, (B, X, Y, K), dtype=jnp.float32)
    weight, bias = init_branch1_params(width, in_features=K, seed=0)

    fwd = jax.jit(branch1_forward, static_argnames=("max_block_bytes",))

    # Default path: whole-sample blocks (grid (B, 1)).
    y1 = jax.block_until_ready(fwd(x, weight, bias))
    # Forced spatial tiling path: small per-step budget -> tx=8, grid (B, 4).
    y2 = jax.block_until_ready(fwd(x, weight, bias, max_block_bytes=48 * 1024))

    # Pure-JAX reference: pad(replicate Y, zero X) -> linear -> permute.
    x_rep = jnp.concatenate([x, jnp.repeat(x[:, :, -1:, :], 8, axis=2)], axis=2)
    x_pad = jnp.pad(x_rep, ((0, 0), (0, 8), (0, 0), (0, 0)))
    y_ref = jnp.einsum("bxyk,ck->bcxy", x_pad, weight,
                       precision=lax.Precision.HIGHEST) + bias[None, :, None, None]

    assert y1.shape == (B, width, X + 8, Y + 8)
    assert y2.shape == (B, width, X + 8, Y + 8)
    assert jnp.allclose(y1, y_ref, rtol=1e-5, atol=1e-5), "mismatch (whole-sample blocks)"
    assert jnp.allclose(y2, y_ref, rtol=1e-5, atol=1e-5), "mismatch (spatially tiled blocks)"

    print("KERNEL_OK")
</pallas_src>

<mosaic_0001>
module attributes {stable_mosaic.version = 11 : i64} {
  func.func @_branch1_kernel(%arg0: i32, %arg1: i32, %arg2: memref<1x5x1024xf32, #tpu.memory_space<vmem>>, %arg3: memref<32x5xf32, #tpu.memory_space<vmem>>, %arg4: memref<32x1xf32, #tpu.memory_space<vmem>>, %arg5: memref<1x32x1024xf32, #tpu.memory_space<vmem>>) attributes {dimension_semantics = [#tpu.dimension_semantics<parallel>, #tpu.dimension_semantics<parallel>], iteration_bounds = array<i64: 2, 1>, scalar_prefetch = 0 : i64, scratch_operands = 0 : i64, tpu.core_type = #tpu.core_type<tc>, window_params = [{transform_indices = @transform_0, window_bounds = array<i64: 1, 5, 1024>}, {pipeline_mode = #tpu.pipeline_mode<synchronous>, transform_indices = @transform_1, window_bounds = array<i64: 32, 5>}, {pipeline_mode = #tpu.pipeline_mode<synchronous>, transform_indices = @transform_2, window_bounds = array<i64: 32, 1>}, {transform_indices = @transform_3, window_bounds = array<i64: 1, 32, 1024>}]} {
    %c0 = arith.constant 0 : index
    %c0_0 = arith.constant 0 : index
    %0 = vector.load %arg3[%c0, %c0_0] : memref<32x5xf32, #tpu.memory_space<vmem>>, vector<32x5xf32>
    %c0_1 = arith.constant 0 : index
    %c0_2 = arith.constant 0 : index
    %c0_3 = arith.constant 0 : index
    %1 = vector.load %arg2[%c0_1, %c0_2, %c0_3] : memref<1x5x1024xf32, #tpu.memory_space<vmem>>, vector<1x5x1024xf32>
    %2 = vector.shape_cast %1 : vector<1x5x1024xf32> to vector<5x1024xf32>
    %cst = arith.constant dense<0.000000e+00> : vector<32x1024xf32>
    %3 = tpu.matmul %0, %2, %cst {dimension_numbers = #tpu.dot_dimension_numbers<[1], [0], [0], [1], [0, 0, 1, 1], [], []>} : vector<32x5xf32>, vector<5x1024xf32>, vector<32x1024xf32> -> vector<32x1024xf32>
    %c0_4 = arith.constant 0 : index
    %c0_5 = arith.constant 0 : index
    %4 = vector.load %arg4[%c0_4, %c0_5] : memref<32x1xf32, #tpu.memory_space<vmem>>, vector<32x1xf32>
    %5 = vector.broadcast %4 : vector<32x1xf32> to vector<32x1024xf32>
    %6 = arith.addf %3, %5 : vector<32x1024xf32>
    %c0_6 = arith.constant 0 : index
    %c0_7 = arith.constant 0 : index
    %c0_8 = arith.constant 0 : index
    %7 = vector.load %arg5[%c0_6, %c0_7, %c0_8] : memref<1x32x1024xf32, #tpu.memory_space<vmem>>, vector<1x32x1024xf32>
    %8 = vector.shape_cast %7 : vector<1x32x1024xf32> to vector<32x1024xf32>
    %9 = vector.shape_cast %6 : vector<32x1024xf32> to vector<1x32x1024xf32>
    tpu.vector_store %arg5[%c0_6, %c0_7, %c0_8], %9 {strides = array<i32>} : memref<1x32x1024xf32, #tpu.memory_space<vmem>>, vector<1x32x1024xf32>,
    return
  }
  func.func @transform_0(%arg0: i32, %arg1: i32) -> (i32, i32, i32) {
    %c0_i32 = arith.constant 0 : i32
    %c0_i32_0 = arith.constant 0 : i32
    return %arg0, %c0_i32, %arg1 : i32, i32, i32
  }
  func.func @transform_1(%arg0: i32, %arg1: i32) -> (i32, i32) {
    %c0_i32 = arith.constant 0 : i32
    %c0_i32_0 = arith.constant 0 : i32
    %c0_i32_1 = arith.constant 0 : i32
    return %c0_i32, %c0_i32_0 : i32, i32
  }
  func.func @transform_2(%arg0: i32, %arg1: i32) -> (i32, i32) {
    %c0_i32 = arith.constant 0 : i32
    %c0_i32_0 = arith.constant 0 : i32
    %c0_i32_1 = arith.constant 0 : i32
    return %c0_i32, %c0_i32_0 : i32, i32
  }
  func.func @transform_3(%arg0: i32, %arg1: i32) -> (i32, i32, i32) {
    %c0_i32 = arith.constant 0 : i32
    %c0_i32_0 = arith.constant 0 : i32
    return %arg0, %c0_i32, %arg1 : i32, i32, i32
  }
}

</mosaic_0001>

<bundles_post_ra>
// kernel: branch1_forward.1
= control target key start
LH: loop header
LB: loop body
LE: loop exit
PB: predicated region body
PF: predicated region fallthrough
CT: control target
= control target key end

     0   :  { %s870_s12 = smov 0   ;;  %s872_s13 = smov 0   ;;  %s1045_s0 = inlined_call_operand.vmem [shape: f32[2,5,1024], index: 0, kind: input, shape index: {}]   ;;  %s1046_s1 = inlined_call_operand.vmem [shape: f32[32,5], index: 1, kind: input, shape index: {}]   ;;  %s1047_s2 = inlined_call_operand.vmem [shape: f32[32,1], index: 2, kind: input, shape index: {}]   ;;  %s1048_s3 = inlined_call_operand.vmem [shape: f32[2,32,1024], index: 3, kind: output, shape index: {}]  }
   0x1   :  { %s874_s14 = smov 0  }
   0x2 LB: > { %s25_s15 = sadd.s32 1, %s842_s13  ;;  %p763_p0 = scmp.ge.s32.totalorder %s846_s14, 1  ;;  %s846_s14 = sphi %s874_s14, %s13_s14   ;;  %s842_s13 = sphi %s872_s13, %s1050_s13   ;;  %s838_s12 = sphi %s870_s12, %s1049_s12  }
   0x3   : > { %p27_p1 = scmp.ge.s32.totalorder %s25_s15, 2  ;;  %p158_p2 = scmp.lt.s32.totalorder %s846_s14, 3 }
   0x5   : > { %s1052_s15 = smov (%p27_p1, %s25_s15), 0  ;;  %p159_p3 = pnand %p763_p0, %p158_p2 }
   0x6   : > { %p191_p4 = scmp.lt.s32.totalorder (!%p159_p3), %s838_s12, 1 }
   0x7   : > { %162 = sbr.rel (%p159_p3) target bundleno = 244 (0xf4), region = 32 }
   0xc   : > { %v848_v0 = vmov 0.0   ;;  %v222_v1 = vld [vmem:[%s1047_s2] sm:$0xff]  ;;  %s1054_s12 = smov (!%p191_p4, %s838_s12), 1  ;;  %v849_v2 = vmov 0   ;;  %v224_v3 = vld [vmem:[%s1047_s2 + $0x10] sm:$0xff]  ;;  %vm259_vm0 = vcmask 1044480  }
   0xd   : > { %348 = vmatprep.mubr.f32.mxu0 %v848_v0  ;;  %437 = vmatprep.mubr.f32.mxu1 %v848_v0  ;;  %s794_s20 = sshll.u32 %s1054_s12, 6  ;;  %v210_v4 = vld [vmem:[%s1046_s1] sm:$0xff]  ;;  %vm246_vm1 = vcmask 39936   ;;  %v211_v13 = vld [vmem:[%s1046_s1 + $0x8] sm:$0xff]  ;;  %v225_v15 = vld [vmem:[%s1047_s2 + $0x18] sm:$0xff]  ;;  %s795_s9 = sshll.u32 %s1054_s12, 8 }
   0xe   : > { %822 = vset.pattern.permute.xlu0 %v849_v2  ;;  %823 = vset.pattern.permute.xlu1 %v849_v2  ;;  %s198_s23 = scalar_lea.vmem %s1045_s0, %s794_s20  ;;  %v223_v14 = vld [vmem:[%s1047_s2 + $0x8] sm:$0xff]  ;;  %v212_v16 = vld [vmem:[%s1046_s1 + $0x10] sm:$0xff]  ;;  %v213_v17 = vld [vmem:[%s1046_s1 + $0x18] sm:$0xff]  ;;  %s964_s16 = scalar_lea.vmem %s1048_s3, %s795_s9 }
   0xf   : > { %228 = vperm.xlu0 %822, %v222_v1   ;;  %238 = vperm.xlu1 %823, %v224_v3   ;;  %v215_v5 = vld [vmem:[%s198_s23 + $0x8] sm:$0x1f]  ;;  %v217_v6 = vld [vmem:[%s198_s23 + $0x18] sm:$0x1f]  ;;  %v214_v7 = vld [vmem:[%s198_s23] sm:$0x1f] }
  0x10   : > { %768 = vmatprep.subr.msk.mxu0 %vm259_vm0, %v215_v5  ;;  %774 = vmatprep.subr.msk.mxu1 %vm259_vm0, %v217_v6  ;;  %v216_v8 = vld [vmem:[%s198_s23 + $0x10] sm:$0x1f]  ;;  %v219_v9 = vld [vmem:[%s198_s23 + $0x28] sm:$0x1f]  ;;  %v221_v10 = vld [vmem:[%s198_s23 + $0x38] sm:$0x1f] }
  0x11   : > { %769 = vmatpush1.msk.msra.mxu0 %vm259_vm0, %v214_v7  ;;  %775 = vmatpush1.msk.msra.mxu1 %vm259_vm0, %v216_v8  ;;  %v218_v11 = vld [vmem:[%s198_s23 + $0x20] sm:$0x1f]  ;;  %v220_v12 = vld [vmem:[%s198_s23 + $0x30] sm:$0x1f] }
  0x12   : > { %770 = vmatmul.mubr.msk.f32.vlgmr.msra.gmra.mxu0 %vm246_vm1, %v210_v4  ;;  %776 = vmatmul.mubr.msk.f32.vlgmr.msra.gmra.mxu1 %vm246_vm1, %v210_v4 }
  0x13   : > { %780 = vmatprep.subr.msk.mxu0 %vm259_vm0, %v219_v9  ;;  %786 = vmatprep.subr.msk.mxu1 %vm259_vm0, %v221_v10 }
  0x14   : > { %781 = vmatpush1.msk.msra.mxu0 %vm259_vm0, %v218_v11  ;;  %787 = vmatpush1.msk.msra.mxu1 %vm259_vm0, %v220_v12 }
  0x15   : > { %354 = vmatprep.mubr.f32.mxu0 %v848_v0  ;;  %443 = vmatprep.mubr.f32.mxu1 %v848_v0 }
  0x16   : > { %771 = vmatmul.mubr.msk.f32.gmra.mxu0 %vm246_vm1, %v211_v13  ;;  %777 = vmatmul.mubr.msk.f32.gmra.mxu1 %vm246_vm1, %v211_v13 }
  0x17   : > { %360 = vmatprep.mubr.f32.mxu0 %v848_v0  ;;  %449 = vmatprep.mubr.f32.mxu1 %v848_v0 }
  0x18   : > { %233 = vperm.xlu0 %822, %v223_v14   ;;  %243 = vperm.xlu1 %823, %v225_v15  }
  0x1a   : > { %772 = vmatmul.mubr.msk.f32.gmra.mxu0 %vm246_vm1, %v212_v16  ;;  %778 = vmatmul.mubr.msk.f32.gmra.mxu1 %vm246_vm1, %v212_v16 }
  0x1b   : > { %366 = vmatprep.mubr.f32.mxu0 %v848_v0  ;;  %455 = vmatprep.mubr.f32.mxu1 %v848_v0 }
  0x1e   : > { %773 = vmatmul.mubr.msk.f32.gmra.mxu0 %vm246_vm1, %v213_v17  ;;  %779 = vmatmul.mubr.msk.f32.gmra.mxu1 %vm246_vm1, %v213_v17 }
  0x1f   : > { %526 = vmatprep.mubr.f32.mxu0 %v848_v0  ;;  %615 = vmatprep.mubr.f32.mxu1 %v848_v0 }
  0x22   : > { %782 = vmatmul.mubr.msk.f32.vlgmr.msra.gmra.mxu0 %vm246_vm1, %v210_v4  ;;  %788 = vmatmul.mubr.msk.f32.vlgmr.msra.gmra.mxu1 %vm246_vm1, %v210_v4 }
  0x23   : > { %532 = vmatprep.mubr.f32.mxu0 %v848_v0  ;;  %621 = vmatprep.mubr.f32.mxu1 %v848_v0 }
  0x26   : > { %783 = vmatmul.mubr.msk.f32.gmra.mxu0 %vm246_vm1, %v211_v13  ;;  %789 = vmatmul.mubr.msk.f32.gmra.mxu1 %vm246_vm1, %v211_v13 }
  0x27   : > { %538 = vmatprep.mubr.f32.mxu0 %v848_v0  ;;  %627 = vmatprep.mubr.f32.mxu1 %v848_v0 }
  0x2a   : > { %784 = vmatmul.mubr.msk.f32.gmra.mxu0 %vm246_vm1, %v212_v16  ;;  %790 = vmatmul.mubr.msk.f32.gmra.mxu1 %vm246_vm1, %v212_v16 }
  0x2b   : > { %544 = vmatprep.mubr.f32.mxu0 %v848_v0  ;;  %633 = vmatprep.mubr.f32.mxu1 %v848_v0 }
  0x2e   : > { %785 = vmatmul.mubr.msk.f32.gmra.mxu0 %vm246_vm1, %v213_v17  ;;  %791 = vmatmul.mubr.msk.f32.gmra.mxu1 %vm246_vm1, %v213_v17 }
  0x8a   : > { %v958_v18 = vpop.permute.xlu0 %228  ;;  %v974_v28 = vpop.permute.xlu1 %238 }
  0x93   : > { %v968_v23 = vpop.permute.xlu0 %233  ;;  %v988_v41 = vpop.permute.xlu1 %243 }
  0xd2   : > { %v350_v19 = vpop.f32.mrf.mxu0  ;;  %v439_v20 = vpop.f32.mrf.mxu1 }
  0xd3   : > { %v351_v21 = vadd.f32 %v350_v19, %v958_v18  ;;  %v440_v22 = vadd.f32 %v439_v20, %v958_v18 }
  0xd4   : > { %v352_v24 = vpop.f32.mrf.mxu0  ;;  %v441_v25 = vpop.f32.mrf.mxu1 }
  0xd5   : > { %640 = vst [vmem:[%s964_s16] sm:$0xff] %v351_v21  ;;  %642 = vst [vmem:[%s964_s16 + $0x10] sm:$0xff] %v440_v22  ;;  %v353_v26 = vadd.f32 %v352_v24, %v958_v18  ;;  %v442_v27 = vadd.f32 %v441_v25, %v958_v18 }
  0xd6   : > { %v356_v29 = vpop.f32.mrf.mxu0  ;;  %v445_v30 = vpop.f32.mrf.mxu1 }
  0xd7   : > { %641 = vst [vmem:[%s964_s16 + $0x8] sm:$0xff] %v353_v26  ;;  %643 = vst [vmem:[%s964_s16 + $0x18] sm:$0xff] %v442_v27  ;;  %v357_v31 = vadd.f32 %v356_v29, %v968_v23  ;;  %v446_v32 = vadd.f32 %v445_v30, %v968_v23 }
  0xd8   : > { %v358_v33 = vpop.f32.mrf.mxu0  ;;  %v447_v34 = vpop.f32.mrf.mxu1 }
  0xd9   : > { %648 = vst [vmem:[%s964_s16 + $0x40] sm:$0xff] %v357_v31  ;;  %650 = vst [vmem:[%s964_s16 + $0x50] sm:$0xff] %v446_v32  ;;  %v359_v35 = vadd.f32 %v358_v33, %v968_v23  ;;  %v448_v36 = vadd.f32 %v447_v34, %v968_v23 }
  0xda   : > { %v362_v37 = vpop.f32.mrf.mxu0  ;;  %v451_v38 = vpop.f32.mrf.mxu1 }
  0xdb   : > { %649 = vst [vmem:[%s964_s16 + $0x48] sm:$0xff] %v359_v35  ;;  %651 = vst [vmem:[%s964_s16 + $0x58] sm:$0xff] %v448_v36  ;;  %v363_v39 = vadd.f32 %v362_v37, %v974_v28  ;;  %v452_v40 = vadd.f32 %v451_v38, %v974_v28 }
  0xdc   : > { %v364_v42 = vpop.f32.mrf.mxu0  ;;  %v453_v43 = vpop.f32.mrf.mxu1 }
  0xdd   : > { %656 = vst [vmem:[%s964_s16 + $0x80] sm:$0xff] %v363_v39  ;;  %658 = vst [vmem:[%s964_s16 + $0x90] sm:$0xff] %v452_v40  ;;  %v365_v44 = vadd.f32 %v364_v42, %v974_v28  ;;  %v454_v45 = vadd.f32 %v453_v43, %v974_v28 }
  0xde   : > { %v368_v46 = vpop.f32.mrf.mxu0  ;;  %v457_v47 = vpop.f32.mrf.mxu1 }
  0xdf   : > { %657 = vst [vmem:[%s964_s16 + $0x88] sm:$0xff] %v365_v44  ;;  %659 = vst [vmem:[%s964_s16 + $0x98] sm:$0xff] %v454_v45  ;;  %v369_v48 = vadd.f32 %v368_v46, %v988_v41  ;;  %v458_v49 = vadd.f32 %v457_v47, %v988_v41 }
  0xe0   : > { %v370_v50 = vpop.f32.mrf.mxu0  ;;  %v459_v51 = vpop.f32.mrf.mxu1 }
  0xe1   : > { %664 = vst [vmem:[%s964_s16 + $0xc0] sm:$0xff] %v369_v48  ;;  %666 = vst [vmem:[%s964_s16 + $0xd0] sm:$0xff] %v458_v49  ;;  %v371_v52 = vadd.f32 %v370_v50, %v988_v41  ;;  %v460_v53 = vadd.f32 %v459_v51, %v988_v41 }
  0xe2   : > { %v528_v54 = vpop.f32.mrf.mxu0  ;;  %v617_v55 = vpop.f32.mrf.mxu1 }
  0xe3   : > { %665 = vst [vmem:[%s964_s16 + $0xc8] sm:$0xff] %v371_v52  ;;  %667 = vst [vmem:[%s964_s16 + $0xd8] sm:$0xff] %v460_v53  ;;  %v529_v56 = vadd.f32 %v528_v54, %v958_v18  ;;  %v618_v57 = vadd.f32 %v617_v55, %v958_v18 }
  0xe4   : > { %v530_v58 = vpop.f32.mrf.mxu0  ;;  %v619_v59 = vpop.f32.mrf.mxu1 }
  0xe5   : > { %644 = vst [vmem:[%s964_s16 + $0x20] sm:$0xff] %v529_v56  ;;  %646 = vst [vmem:[%s964_s16 + $0x30] sm:$0xff] %v618_v57  ;;  %v531_v60 = vadd.f32 %v530_v58, %v958_v18  ;;  %v620_v61 = vadd.f32 %v619_v59, %v958_v18 }
  0xe6   : > { %v534_v62 = vpop.f32.mrf.mxu0  ;;  %v623_v63 = vpop.f32.mrf.mxu1 }
  0xe7   : > { %645 = vst [vmem:[%s964_s16 + $0x28] sm:$0xff] %v531_v60  ;;  %647 = vst [vmem:[%s964_s16 + $0x38] sm:$0xff] %v620_v61  ;;  %v535_v0 = vadd.f32 %v534_v62, %v968_v23  ;;  %v624_v1 = vadd.f32 %v623_v63, %v968_v23 }
  0xe8   : > { %v536_v2 = vpop.f32.mrf.mxu0  ;;  %v625_v3 = vpop.f32.mrf.mxu1 }
  0xe9   : > { %652 = vst [vmem:[%s964_s16 + $0x60] sm:$0xff] %v535_v0  ;;  %654 = vst [vmem:[%s964_s16 + $0x70] sm:$0xff] %v624_v1  ;;  %v537_v4 = vadd.f32 %v536_v2, %v968_v23  ;;  %v626_v5 = vadd.f32 %v625_v3, %v968_v23 }
  0xea   : > { %v540_v6 = vpop.f32.mrf.mxu0  ;;  %v629_v7 = vpop.f32.mrf.mxu1 }
  0xeb   : > { %653 = vst [vmem:[%s964_s16 + $0x68] sm:$0xff] %v537_v4  ;;  %655 = vst [vmem:[%s964_s16 + $0x78] sm:$0xff] %v626_v5  ;;  %v541_v8 = vadd.f32 %v540_v6, %v974_v28  ;;  %v630_v9 = vadd.f32 %v629_v7, %v974_v28 }
  0xec   : > { %v542_v10 = vpop.f32.mrf.mxu0  ;;  %v631_v11 = vpop.f32.mrf.mxu1 }
  0xed   : > { %660 = vst [vmem:[%s964_s16 + $0xa0] sm:$0xff] %v541_v8  ;;  %662 = vst [vmem:[%s964_s16 + $0xb0] sm:$0xff] %v630_v9  ;;  %v543_v12 = vadd.f32 %v542_v10, %v974_v28  ;;  %v632_v13 = vadd.f32 %v631_v11, %v974_v28 }
  0xee   : > { %v546_v14 = vpop.f32.mrf.mxu0  ;;  %v635_v15 = vpop.f32.mrf.mxu1 }
  0xef   : > { %661 = vst [vmem:[%s964_s16 + $0xa8] sm:$0xff] %v543_v12  ;;  %663 = vst [vmem:[%s964_s16 + $0xb8] sm:$0xff] %v632_v13  ;;  %v547_v16 = vadd.f32 %v546_v14, %v988_v41  ;;  %v636_v17 = vadd.f32 %v635_v15, %v988_v41 }
  0xf0   : > { %v548_v18 = vpop.f32.mrf.mxu0  ;;  %v637_v19 = vpop.f32.mrf.mxu1 }
  0xf1   : > { %668 = vst [vmem:[%s964_s16 + $0xe0] sm:$0xff] %v547_v16  ;;  %670 = vst [vmem:[%s964_s16 + $0xf0] sm:$0xff] %v636_v17  ;;  %v549_v20 = vadd.f32 %v548_v18, %v988_v41  ;;  %v638_v21 = vadd.f32 %v637_v19, %v988_v41 }
  0xf3   : > { %669 = vst [vmem:[%s964_s16 + $0xe8] sm:$0xff] %v549_v20  ;;  %671 = vst [vmem:[%s964_s16 + $0xf8] sm:$0xff] %v638_v21 }
  0xf4 PF: > { %s13_s14 = sadd.s32 1, %s846_s14   ;;  %s1049_s12 = smov %s842_s13 }
  0xf5   : > { %p10_p5 = scmp.ge.s32.totalorder %s13_s14, 4   ;;  %s1050_s13 = smov %s1052_s15 }
  0xf7   :  { %12 = sbr.rel (!%p10_p5) target bundleno = 2 (0x2), region = 62 }

</bundles_post_ra>
